<compile_context>
chip_gen: v7x
topology: tpu7x:2x2x1
jax: 0.10.0
libtpu: 0.0.40
codegen_flags: <defaults>
</compile_context>

<pallas_src>
import functools
import math

import jax
import jax.numpy as jnp
from jax.experimental import pallas as pl
from jax.experimental.pallas import tpu as pltpu


# ----------------------------- kernels --------------------------------------

def _packed_mxu_kernel(x_ref, w_ref, b_ref, o_ref):
    # x_ref: (tile_r, g) packed inputs; w_ref: (g, g*size) block-diagonal
    # selector (W[k]/size on the diagonal blocks); b_ref: (1, g*size).
    # One MXU contraction selects+scales (exactly one non-zero term per output
    # element); the VPU only adds the bias.  HIGHEST keeps f32 products exact
    # (default MXU precision would round operands to bf16).
    x = x_ref[...].astype(jnp.float32)
    acc = jnp.dot(x, w_ref[...],
                  preferred_element_type=jnp.float32,
                  precision=jax.lax.Precision.HIGHEST)
    o_ref[...] = (acc + b_ref[...]).astype(o_ref.dtype)


def _packed_vpu_kernel(x_ref, w_ref, b_ref, o_ref, *, groups):
    # Rank-1 broadcast fallback: only used for tiny group counts or tiny
    # inputs where MXU setup is not worth it.
    x = x_ref[...].astype(jnp.float32)
    w = w_ref[...]
    acc = x[:, 0:1] * w[0:1, :]
    for j in range(1, groups):
        acc = acc + x[:, j:j + 1] * w[j:j + 1, :]
    o_ref[...] = (acc + b_ref[...]).astype(o_ref.dtype)


def _rowwise_kernel(x_ref, w_ref, b_ref, o_ref):
    # Unpacked path: one output row of width `size` per input element.
    # Minimal 1 mul + 1 add per output element on the VPU.
    x = x_ref[...].astype(jnp.float32)           # (tile_r, 1)
    o_ref[...] = (x * w_ref[...] + b_ref[...]).astype(o_ref.dtype)


# ----------------------------- helpers --------------------------------------

def _device_defaults():
    """(target_block_bytes, vmem_limit_bytes) per TPU generation."""
    kind = ""
    try:
        kind = jax.devices()[0].device_kind.lower()
    except Exception:
        pass
    if "v5" in kind or "v6" in kind:
        # 128 MiB physical VMEM: bigger writeback blocks, generous scoped limit.
        return 12 << 20, 64 << 20
    # v7x (64 MiB physical VMEM per TC) and unknown devices: stay conservative.
    return 6 << 20, 48 << 20


def _choose_group(size, n, cap_bytes=4 << 20):
    """Packing factor g (g*size is a multiple of 128 lanes).

    Returns 1 when packing is unnecessary (size % 128 == 0) or impossible
    within the VMEM budget for the block-diagonal selector (large odd size).
    Prefers the largest g <= 128 that divides n (no pad rows -> no post-kernel
    slice); otherwise the largest g under the cap.
    """
    g0 = 128 // math.gcd(size, 128)
    if g0 == 1:
        return 1
    if g0 * g0 * size * 4 > cap_bytes:
        return 1  # selector too big even at the minimal packing factor
    best_div, best_any = 0, 0
    m = 1
    while g0 * m <= 128:
        g = g0 * m
        if g * g * size * 4 <= cap_bytes:
            best_any = g
            if n % g == 0:
                best_div = g
        m += 1
    return best_div if best_div else best_any


def _pick_tile_rows(n_rows, row_bytes, target_block_bytes):
    """Row-tile size: big blocks, but >= ~4 grid steps whenever output > 1 MiB
    (pipelined writeback + megacore sharding); rows stay multiples of 8."""
    total_bytes = n_rows * row_bytes
    if total_bytes <= (1 << 20):
        return n_rows                      # single block == full array dims
    tile_r = max(8, (target_block_bytes // max(row_bytes, 1)) // 8 * 8)
    max_tile = max(8, (n_rows // 4) // 8 * 8)
    tile_r = min(tile_r, max_tile)
    if tile_r >= n_rows:
        return n_rows
    return tile_r


# ----------------------------- wrapper --------------------------------------

def learnable_embedding(x, weight, bias, *, size: int,
                        out_dtype=jnp.float32,
                        target_block_bytes=None, vmem_limit_bytes=None):
    """y[..., k] = x[...].astype(f32) / size * weight[k] + bias[k]."""
    if target_block_bytes is None or vmem_limit_bytes is None:
        tb, vl = _device_defaults()
        target_block_bytes = target_block_bytes or tb
        vmem_limit_bytes = vmem_limit_bytes or vl

    orig_shape = tuple(x.shape)
    n = int(math.prod(orig_shape)) if orig_shape else 1
    out_elt = jnp.dtype(out_dtype).itemsize

    # Parameter prep (cheap; fold 1/size into the weight).  In a real model,
    # jit the caller so XLA hoists/CSEs these constants out of the hot path.
    w = jnp.reshape(weight, (-1,)).astype(jnp.float32) / float(size)
    b = jnp.reshape(bias, (-1,)).astype(jnp.float32)

    compiler_params = pltpu.CompilerParams(
        dimension_semantics=("parallel",),     # shard rows across v7x's 2 TCs
        vmem_limit_bytes=int(vmem_limit_bytes),
    )

    g = _choose_group(size, n)

    if g <= 1:
        # Unpacked path: size already a multiple of 128 (unmasked stores
        # anyway) or the selector would blow VMEM (large size -> masked-store
        # fraction is small).  x stays in its original dtype.
        x2 = jnp.reshape(x, (n, 1))
        w_row = w.reshape(1, size)
        b_row = b.reshape(1, size)
        tile_r = _pick_tile_rows(n, size * out_elt, target_block_bytes)
        grid = (pl.cdiv(n, tile_r),)
        out = pl.pallas_call(
            _rowwise_kernel,
            out_shape=jax.ShapeDtypeStruct((n, size), out_dtype),
            grid_spec=pltpu.PrefetchScalarGridSpec(
                num_scalar_prefetch=0,
                grid=grid,
                in_specs=[
                    pl.BlockSpec((tile_r, 1), lambda i: (i, 0)),     # x column
                    pl.BlockSpec((1, size), lambda i: (0, 0)),       # weight row
                    pl.BlockSpec((1, size), lambda i: (0, 0)),       # bias row
                ],
                out_specs=pl.BlockSpec((tile_r, size), lambda i: (i, 0)),
            ),
            compiler_params=compiler_params,
        )(x2, w_row, b_row)
        return out.reshape(orig_shape + (size,))

    # ----- packed, lane-dense path -----
    lane_w = g * size
    n_rows = -(-n // g)                         # cdiv
    n_packed = n_rows * g

    x_flat = jnp.reshape(x, (n,))               # original dtype, cast in-kernel
    if n_packed != n:
        x_flat = jnp.pad(x_flat, (0, n_packed - n))
    x_rows = x_flat.reshape(n_rows, g)

    # Block-diagonal selector: W_sel[j, j*size + k] = w[k] (1/size folded in).
    eye = jnp.eye(g, dtype=jnp.float32)
    w_sel = (eye[:, :, None] * w[None, None, :]).reshape(g, lane_w)
    b_rep = jnp.tile(b, (g,)).reshape(1, lane_w)

    tile_r = _pick_tile_rows(n_rows, lane_w * out_elt, target_block_bytes)
    grid = (pl.cdiv(n_rows, tile_r),)

    use_mxu = (g >= 8) and (n_rows >= 8)
    kernel = (_packed_mxu_kernel if use_mxu
              else functools.partial(_packed_vpu_kernel, groups=g))

    out = pl.pallas_call(
        kernel,
        out_shape=jax.ShapeDtypeStruct((n_rows, lane_w), out_dtype),
        grid_spec=pltpu.PrefetchScalarGridSpec(
            num_scalar_prefetch=0,
            grid=grid,
            in_specs=[
                pl.BlockSpec((tile_r, g), lambda i: (i, 0)),          # x rows
                pl.BlockSpec((g, lane_w), lambda i: (0, 0)),          # W_sel (resident)
                pl.BlockSpec((1, lane_w), lambda i: (0, 0)),          # bias   (resident)
            ],
            out_specs=pl.BlockSpec((tile_r, lane_w), lambda i: (i, 0)),
        ),
        compiler_params=compiler_params,
    )(x_rows, w_sel, b_rep)

    # Packed (n_rows, g*size) buffer is row-major identical to (n_packed, size);
    # pad rows (if any) sit strictly past the real data.
    if n_packed != n:
        # TODO(synk): this full-buffer trim re-reads/re-writes the output; it only
        # triggers when no packing factor divides n — fuse into the consumer or
        # emit the ragged tail from a separate tiny call to avoid it entirely.
        out = out.reshape(n_packed, size)[:n]
    return out.reshape(orig_shape + (size,))


# ----------------------------- demo / check ---------------------------------

if __name__ == "__main__":
    SIZE = 32            # embedding size (Linear(1, SIZE))
    BATCH, SEQ = 2, 8    # small input shape

    key = jax.random.PRNGKey(0)
    k_x, k_w, k_b, k_x2 = jax.random.split(key, 4)

    # torch Linear(1, size): weight (size, 1), bias (size,)
    weight = jax.random.normal(k_w, (SIZE, 1), dtype=jnp.float32) * 0.5
    bias = jax.random.normal(k_b, (SIZE,), dtype=jnp.float32) * 0.1
    w_flat = weight.reshape(-1)

    # Small test (token-like ints, matches the module's typical use).
    x = jax.random.randint(k_x, (BATCH, SEQ), 0, 100).astype(jnp.int32)
    y = jax.block_until_ready(learnable_embedding(x, weight, bias, size=SIZE))
    y_ref = x.astype(jnp.float32)[..., None] / SIZE * w_flat + bias
    assert y.shape == (BATCH, SEQ, SIZE), y.shape
    assert jnp.allclose(y, y_ref, atol=1e-5, rtol=1e-5), "small-shape mismatch"

    # Moderate test: exercises the MXU packed path and a multi-block grid.
    x2 = jax.random.normal(k_x2, (8, 2048), dtype=jnp.float32)
    y2 = jax.block_until_ready(learnable_embedding(x2, weight, bias, size=SIZE))
    y2_ref = x2.astype(jnp.float32)[..., None] / SIZE * w_flat + bias
    assert y2.shape == (8, 2048, SIZE), y2.shape
    assert jnp.allclose(y2, y2_ref, atol=1e-5, rtol=1e-5), "moderate-shape mismatch"

    print("KERNEL_OK")
</pallas_src>

<mosaic_0001>
module attributes {stable_mosaic.version = 11 : i64} {
  func.func @_packed_vpu_kernel(%arg0: i32, %arg1: memref<1x16xi32, #tpu.memory_space<vmem>>, %arg2: memref<16x512xf32, #tpu.memory_space<vmem>>, %arg3: memref<1x512xf32, #tpu.memory_space<vmem>>, %arg4: memref<1x512xf32, #tpu.memory_space<vmem>>) attributes {dimension_semantics = [#tpu.dimension_semantics<parallel>], iteration_bounds = array<i64: 1>, scalar_prefetch = 0 : i64, scratch_operands = 0 : i64, tpu.core_type = #tpu.core_type<tc>, window_params = [{transform_indices = @transform_0, window_bounds = array<i64: 1, 16>}, {pipeline_mode = #tpu.pipeline_mode<synchronous>, transform_indices = @transform_1, window_bounds = array<i64: 16, 512>}, {pipeline_mode = #tpu.pipeline_mode<synchronous>, transform_indices = @transform_2, window_bounds = array<i64: 1, 512>}, {transform_indices = @transform_3, window_bounds = array<i64: 1, 512>}]} {
    %c0 = arith.constant 0 : index
    %c0_0 = arith.constant 0 : index
    %0 = vector.load %arg1[%c0, %c0_0] : memref<1x16xi32, #tpu.memory_space<vmem>>, vector<1x16xi32>
    %1 = arith.sitofp %0 : vector<1x16xi32> to vector<1x16xf32>
    %c0_1 = arith.constant 0 : index
    %c0_2 = arith.constant 0 : index
    %2 = vector.load %arg2[%c0_1, %c0_2] : memref<16x512xf32, #tpu.memory_space<vmem>>, vector<16x512xf32>
    %3 = vector.extract_strided_slice %1 {offsets = [0, 0], sizes = [1, 1], strides = [1, 1]} : vector<1x16xf32> to vector<1x1xf32>
    %4 = vector.extract_strided_slice %2 {offsets = [0, 0], sizes = [1, 512], strides = [1, 1]} : vector<16x512xf32> to vector<1x512xf32>
    %5 = vector.broadcast %3 : vector<1x1xf32> to vector<1x512xf32>
    %6 = arith.mulf %5, %4 : vector<1x512xf32>
    %7 = vector.extract_strided_slice %1 {offsets = [0, 1], sizes = [1, 1], strides = [1, 1]} : vector<1x16xf32> to vector<1x1xf32>
    %8 = vector.extract_strided_slice %2 {offsets = [1, 0], sizes = [1, 512], strides = [1, 1]} : vector<16x512xf32> to vector<1x512xf32>
    %9 = vector.broadcast %7 : vector<1x1xf32> to vector<1x512xf32>
    %10 = arith.mulf %9, %8 : vector<1x512xf32>
    %11 = arith.addf %6, %10 : vector<1x512xf32>
    %12 = vector.extract_strided_slice %1 {offsets = [0, 2], sizes = [1, 1], strides = [1, 1]} : vector<1x16xf32> to vector<1x1xf32>
    %13 = vector.extract_strided_slice %2 {offsets = [2, 0], sizes = [1, 512], strides = [1, 1]} : vector<16x512xf32> to vector<1x512xf32>
    %14 = vector.broadcast %12 : vector<1x1xf32> to vector<1x512xf32>
    %15 = arith.mulf %14, %13 : vector<1x512xf32>
    %16 = arith.addf %11, %15 : vector<1x512xf32>
    %17 = vector.extract_strided_slice %1 {offsets = [0, 3], sizes = [1, 1], strides = [1, 1]} : vector<1x16xf32> to vector<1x1xf32>
    %18 = vector.extract_strided_slice %2 {offsets = [3, 0], sizes = [1, 512], strides = [1, 1]} : vector<16x512xf32> to vector<1x512xf32>
    %19 = vector.broadcast %17 : vector<1x1xf32> to vector<1x512xf32>
    %20 = arith.mulf %19, %18 : vector<1x512xf32>
    %21 = arith.addf %16, %20 : vector<1x512xf32>
    %22 = vector.extract_strided_slice %1 {offsets = [0, 4], sizes = [1, 1], strides = [1, 1]} : vector<1x16xf32> to vector<1x1xf32>
    %23 = vector.extract_strided_slice %2 {offsets = [4, 0], sizes = [1, 512], strides = [1, 1]} : vector<16x512xf32> to vector<1x512xf32>
    %24 = vector.broadcast %22 : vector<1x1xf32> to vector<1x512xf32>
    %25 = arith.mulf %24, %23 : vector<1x512xf32>
    %26 = arith.addf %21, %25 : vector<1x512xf32>
    %27 = vector.extract_strided_slice %1 {offsets = [0, 5], sizes = [1, 1], strides = [1, 1]} : vector<1x16xf32> to vector<1x1xf32>
    %28 = vector.extract_strided_slice %2 {offsets = [5, 0], sizes = [1, 512], strides = [1, 1]} : vector<16x512xf32> to vector<1x512xf32>
    %29 = vector.broadcast %27 : vector<1x1xf32> to vector<1x512xf32>
    %30 = arith.mulf %29, %28 : vector<1x512xf32>
    %31 = arith.addf %26, %30 : vector<1x512xf32>
    %32 = vector.extract_strided_slice %1 {offsets = [0, 6], sizes = [1, 1], strides = [1, 1]} : vector<1x16xf32> to vector<1x1xf32>
    %33 = vector.extract_strided_slice %2 {offsets = [6, 0], sizes = [1, 512], strides = [1, 1]} : vector<16x512xf32> to vector<1x512xf32>
    %34 = vector.broadcast %32 : vector<1x1xf32> to vector<1x512xf32>
    %35 = arith.mulf %34, %33 : vector<1x512xf32>
    %36 = arith.addf %31, %35 : vector<1x512xf32>
    %37 = vector.extract_strided_slice %1 {offsets = [0, 7], sizes = [1, 1], strides = [1, 1]} : vector<1x16xf32> to vector<1x1xf32>
    %38 = vector.extract_strided_slice %2 {offsets = [7, 0], sizes = [1, 512], strides = [1, 1]} : vector<16x512xf32> to vector<1x512xf32>
    %39 = vector.broadcast %37 : vector<1x1xf32> to vector<1x512xf32>
    %40 = arith.mulf %39, %38 : vector<1x512xf32>
    %41 = arith.addf %36, %40 : vector<1x512xf32>
    %42 = vector.extract_strided_slice %1 {offsets = [0, 8], sizes = [1, 1], strides = [1, 1]} : vector<1x16xf32> to vector<1x1xf32>
    %43 = vector.extract_strided_slice %2 {offsets = [8, 0], sizes = [1, 512], strides = [1, 1]} : vector<16x512xf32> to vector<1x512xf32>
    %44 = vector.broadcast %42 : vector<1x1xf32> to vector<1x512xf32>
    %45 = arith.mulf %44, %43 : vector<1x512xf32>
    %46 = arith.addf %41, %45 : vector<1x512xf32>
    %47 = vector.extract_strided_slice %1 {offsets = [0, 9], sizes = [1, 1], strides = [1, 1]} : vector<1x16xf32> to vector<1x1xf32>
    %48 = vector.extract_strided_slice %2 {offsets = [9, 0], sizes = [1, 512], strides = [1, 1]} : vector<16x512xf32> to vector<1x512xf32>
    %49 = vector.broadcast %47 : vector<1x1xf32> to vector<1x512xf32>
    %50 = arith.mulf %49, %48 : vector<1x512xf32>
    %51 = arith.addf %46, %50 : vector<1x512xf32>
    %52 = vector.extract_strided_slice %1 {offsets = [0, 10], sizes = [1, 1], strides = [1, 1]} : vector<1x16xf32> to vector<1x1xf32>
    %53 = vector.extract_strided_slice %2 {offsets = [10, 0], sizes = [1, 512], strides = [1, 1]} : vector<16x512xf32> to vector<1x512xf32>
    %54 = vector.broadcast %52 : vector<1x1xf32> to vector<1x512xf32>
    %55 = arith.mulf %54, %53 : vector<1x512xf32>
    %56 = arith.addf %51, %55 : vector<1x512xf32>
    %57 = vector.extract_strided_slice %1 {offsets = [0, 11], sizes = [1, 1], strides = [1, 1]} : vector<1x16xf32> to vector<1x1xf32>
    %58 = vector.extract_strided_slice %2 {offsets = [11, 0], sizes = [1, 512], strides = [1, 1]} : vector<16x512xf32> to vector<1x512xf32>
    %59 = vector.broadcast %57 : vector<1x1xf32> to vector<1x512xf32>
    %60 = arith.mulf %59, %58 : vector<1x512xf32>
    %61 = arith.addf %56, %60 : vector<1x512xf32>
    %62 = vector.extract_strided_slice %1 {offsets = [0, 12], sizes = [1, 1], strides = [1, 1]} : vector<1x16xf32> to vector<1x1xf32>
    %63 = vector.extract_strided_slice %2 {offsets = [12, 0], sizes = [1, 512], strides = [1, 1]} : vector<16x512xf32> to vector<1x512xf32>
    %64 = vector.broadcast %62 : vector<1x1xf32> to vector<1x512xf32>
    %65 = arith.mulf %64, %63 : vector<1x512xf32>
    %66 = arith.addf %61, %65 : vector<1x512xf32>
    %67 = vector.extract_strided_slice %1 {offsets = [0, 13], sizes = [1, 1], strides = [1, 1]} : vector<1x16xf32> to vector<1x1xf32>
    %68 = vector.extract_strided_slice %2 {offsets = [13, 0], sizes = [1, 512], strides = [1, 1]} : vector<16x512xf32> to vector<1x512xf32>
    %69 = vector.broadcast %67 : vector<1x1xf32> to vector<1x512xf32>
    %70 = arith.mulf %69, %68 : vector<1x512xf32>
    %71 = arith.addf %66, %70 : vector<1x512xf32>
    %72 = vector.extract_strided_slice %1 {offsets = [0, 14], sizes = [1, 1], strides = [1, 1]} : vector<1x16xf32> to vector<1x1xf32>
    %73 = vector.extract_strided_slice %2 {offsets = [14, 0], sizes = [1, 512], strides = [1, 1]} : vector<16x512xf32> to vector<1x512xf32>
    %74 = vector.broadcast %72 : vector<1x1xf32> to vector<1x512xf32>
    %75 = arith.mulf %74, %73 : vector<1x512xf32>
    %76 = arith.addf %71, %75 : vector<1x512xf32>
    %77 = vector.extract_strided_slice %1 {offsets = [0, 15], sizes = [1, 1], strides = [1, 1]} : vector<1x16xf32> to vector<1x1xf32>
    %78 = vector.extract_strided_slice %2 {offsets = [15, 0], sizes = [1, 512], strides = [1, 1]} : vector<16x512xf32> to vector<1x512xf32>
    %79 = vector.broadcast %77 : vector<1x1xf32> to vector<1x512xf32>
    %80 = arith.mulf %79, %78 : vector<1x512xf32>
    %81 = arith.addf %76, %80 : vector<1x512xf32>
    %c0_3 = arith.constant 0 : index
    %c0_4 = arith.constant 0 : index
    %82 = vector.load %arg3[%c0_3, %c0_4] : memref<1x512xf32, #tpu.memory_space<vmem>>, vector<1x512xf32>
    %83 = arith.addf %81, %82 : vector<1x512xf32>
    %c0_5 = arith.constant 0 : index
    %c0_6 = arith.constant 0 : index
    %84 = vector.load %arg4[%c0_5, %c0_6] : memref<1x512xf32, #tpu.memory_space<vmem>>, vector<1x512xf32>
    tpu.vector_store %arg4[%c0_5, %c0_6], %83 {strides = array<i32>} : memref<1x512xf32, #tpu.memory_space<vmem>>, vector<1x512xf32>,
    return
  }
  func.func @transform_0(%arg0: i32) -> (i32, i32) {
    %c0_i32 = arith.constant 0 : i32
    %c0_i32_0 = arith.constant 0 : i32
    return %arg0, %c0_i32 : i32, i32
  }
  func.func @transform_1(%arg0: i32) -> (i32, i32) {
    %c0_i32 = arith.constant 0 : i32
    %c0_i32_0 = arith.constant 0 : i32
    %c0_i32_1 = arith.constant 0 : i32
    return %c0_i32, %c0_i32_0 : i32, i32
  }
  func.func @transform_2(%arg0: i32) -> (i32, i32) {
    %c0_i32 = arith.constant 0 : i32
    %c0_i32_0 = arith.constant 0 : i32
    %c0_i32_1 = arith.constant 0 : i32
    return %c0_i32, %c0_i32_0 : i32, i32
  }
  func.func @transform_3(%arg0: i32) -> (i32, i32) {
    %c0_i32 = arith.constant 0 : i32
    %c0_i32_0 = arith.constant 0 : i32
    return %arg0, %c0_i32 : i32, i32
  }
}

</mosaic_0001>

<bundles_post_ra>
// kernel: tpu_custom_call.1
= control target key start
LH: loop header
LB: loop body
LE: loop exit
PB: predicated region body
PF: predicated region fallthrough
CT: control target
= control target key end

     0   :  { %8 = vsyncpa [#allocation3], 0  ;;  %s875_s0 = inlined_call_operand.hbm [shape: s32[1,16], index: 0, kind: input, shape index: {}]   ;;  %s876_s1 = inlined_call_operand.hbm [shape: f32[16,512], index: 1, kind: input, shape index: {}]   ;;  %s877_s2 = inlined_call_operand.vmem [shape: f32[1,512], index: 2, kind: input, shape index: {}]   ;;  %s878_s3 = inlined_call_operand.hbm [shape: f32[1,512], index: 3, kind: output, shape index: {}]  }
   0x1   :  { %9 = vsyncpa [#allocation6], 0 }
   0x2   :  { %10 = vsyncpa [#allocation4], 0  ;;  %s659_s12 = smov [#allocation2]   ;;  %s660_s14 = smov [#allocation5]  }
   0x3   :  { %s17_s13 = sshll.u32 %s659_s12, 4  ;;  %s26_s15 = sshll.u32 %s660_s14, 4  ;;  %s18_s13 = int_to_ptr.vmem [resolvable:$true] %s17_s13  ;;  %s701_s15 = int_to_ptr.vmem [resolvable:$true] %s26_s15 }
   0x4   :  { %s587_s18 = scalar_lea.hbm %s875_s0, 16 }
   0x5   :  { %p588_p0 = scmp.ne.s32.totalorder %s875_s0, %s587_s18  ;;  %p591_p1 = scmp.lt.u32.totalorder %s587_s18, %s875_s0 }
   0x7   :  { %p593_p2 = pnand %p591_p1, %p588_p0 }
   0x9   :  { %596 = shalt.err (!%p593_p2)
}
   0xa   :  { %s597_s23 = scalar_lea.vmem %s18_s13, 16  ;;  %s601_s24 = scalar_lea.vmem %s18_s13, 32 }
   0xb   :  { %p598_p3 = scmp.ne.s32.totalorder %s18_s13, %s597_s23  ;;  %p602_p4 = scmp.lt.s32.totalorder %s18_s13, %s18_s13 }
   0xc   :  { %p603_p5 = scmp.lt.s32.totalorder %s601_s24, %s597_s23 }
   0xe   :  { %p604_p6 = por %p603_p5, %p602_p4 }
  0x10   :  { %p605_p7 = pnand %p604_p6, %p598_p3 }
  0x12   :  { %608 = shalt.err (!%p605_p7)
}
  0x13   :  { %20 = dma.hbm_to_vmem [thread:$0]  %s875_s0, 16, %s18_s13, [#allocation3]  }
  0x14   :  { %s609_s29 = scalar_lea.hbm %s876_s1, 1024 }
  0x15   :  { %p610_p8 = scmp.ne.s32.totalorder %s876_s1, %s609_s29  ;;  %p613_p9 = scmp.lt.u32.totalorder %s609_s29, %s876_s1 }
  0x17   :  { %p615_p10 = pnand %p613_p9, %p610_p8 }
  0x19   :  { %618 = shalt.err (!%p615_p10)
}
  0x1a   :  { %s619_s7 = scalar_lea.vmem %s701_s15, 1024  ;;  %p624_p12 = scmp.lt.s32.totalorder %s701_s15, %s701_s15 }
  0x1b   :  { %p620_p11 = scmp.ne.s32.totalorder %s701_s15, %s619_s7  ;;  %p625_p13 = scmp.lt.s32.totalorder %s619_s7, %s619_s7 }
  0x1d   :  { %p626_p0 = por %p625_p13, %p624_p12 }
  0x1f   :  { %p627_p1 = pnand %p626_p0, %p620_p11 }
  0x21   :  { %630 = shalt.err (!%p627_p1)
}
  0x22   :  { %s661_s0 = smov 512   ;;  %s662_s8 = smov 32  }
  0x23   :  { %32 = dma.hbm_to_vmem [thread:$0]  %s876_s1, 1024, %s701_s15, [#allocation6], %s661_s0, %s661_s0, %s662_s8  }
  0x24   :  { %653 = dma.done.wait [#allocation3], 16  }
  0x25   :  { %654 = vsyncadd [#allocation3], 4294967280 }
  0x26   :  { %655 = dma.done.wait [#allocation6], 1024  }
  0x27   :  { %656 = vsyncadd [#allocation6], 4294966272  ;;  %v663_v0 = vmov 2   ;;  %v664_v1 = vmov 1   ;;  %v41_v2 = vld [vmem:[#allocation2] sm:$0x1]  ;;  %v56_v18 = vlaneseq }
  0x28   :  { %572 = vset.pattern.permute.xlu1 %v663_v0  ;;  %570 = vset.pattern.permute.xlu0 %v664_v1  ;;  %v42_v3 = vcvt.s32.f32 %v41_v2  ;;  %v665_v4 = vmov 3   ;;  %v666_v5 = vmov 0   ;;  %v667_v6 = vmov 4   ;;  %v738_v21 = vld [vmem:[#allocation5] sm:$0xff]  ;;  %v740_v22 = vld [vmem:[#allocation5 + $0x8] sm:$0xff]  ;;  %v751_v30 = vld [vmem:[#allocation5 + $0x10] sm:$0xff] }
  0x29   :  { %v668_v7 = vmov 5   ;;  %v669_v8 = vmov 6   ;;  %v670_v9 = vmov 8   ;;  %v671_v10 = vmov 7   ;;  %v748_v28 = vld [vmem:[%s877_s2] sm:$0xf] }
  0x2a   :  { %93 = vperm.xlu1 %572, %v42_v3   ;;  %65 = vperm.xlu0 %570, %v42_v3   ;;  %v672_v11 = vmov 11   ;;  %v673_v12 = vmov 9   ;;  %v674_v13 = vmov 14   ;;  %v675_v14 = vmov 10   ;;  %v753_v31 = vld [vmem:[#allocation5 + $0x18] sm:$0xff]  ;;  %s680_s2 = smov [#allocation7]  }
  0x2b   :  { %v676_v15 = vmov 15   ;;  %v677_v16 = vmov 12   ;;  %v678_v17 = vmov 13   ;;  %v733_v19 = vshrl.u32 %v56_v18, 7  ;;  %s538_s12 = sshll.u32 %s680_s2, 4  ;;  %s539_s12 = int_to_ptr.vmem [resolvable:$true] %s538_s12 }
  0x2c   :  { %v679_v46 = vmov 1966171168   ;;  %vm529_vm0 = vcmp.lt.s32.totalorder %v56_v18, 512  ;;  %s631_s13 = scalar_lea.vmem %s539_s12, 64  ;;  %p636_p3 = scmp.lt.s32.totalorder %s539_s12, %s539_s12 }
  0x2d   :  { %v736_v20 = vsub.s32 0, %v733_v19  ;;  %v480_v27 = vsub.s32 1, %v733_v19  ;;  %v484_v29 = vsub.s32 2, %v733_v19  ;;  %v488_v42 = vsub.s32 3, %v733_v19  ;;  %p632_p2 = scmp.ne.s32.totalorder %s539_s12, %s631_s13  ;;  %p637_p4 = scmp.lt.s32.totalorder %s631_s13, %s631_s13 }
  0x2e   :  { %573 = vset.pattern.permute.xlu1 %v665_v4  ;;  %571 = vset.pattern.permute.xlu0 %v666_v5  ;;  %v772_v47 = vunpack.c.l.s4 %v679_v46 }
  0x2f   :  { %121 = vperm.xlu1 %573, %v42_v3   ;;  %53 = vperm.xlu0 %571, %v42_v3   ;;  %v477_v40 = vrot.slane %v748_v28, %v736_v20  ;;  %v764_v41 = vrot.slane %v748_v28, %v480_v27  ;;  %v770_v45 = vrot.slane %v748_v28, %v484_v29  ;;  %p638_p5 = por %p637_p4, %p636_p3 }
  0x31   :  { %p639_p6 = pnand %p638_p5, %p632_p2 }
  0x33   :  { %574 = vset.pattern.permute.xlu1 %v667_v6  ;;  %575 = vset.pattern.permute.xlu0 %v668_v7 }
  0x34   :  { %149 = vperm.xlu1 %574, %v42_v3   ;;  %177 = vperm.xlu0 %575, %v42_v3  }
  0x38   :  { %576 = vset.pattern.permute.xlu1 %v669_v8  ;;  %578 = vset.pattern.permute.xlu0 %v670_v9 }
  0x39   :  { %205 = vperm.xlu1 %576, %v42_v3   ;;  %261 = vperm.xlu0 %578, %v42_v3  }
  0x3d   :  { %577 = vset.pattern.permute.xlu1 %v671_v10  ;;  %581 = vset.pattern.permute.xlu0 %v672_v11 }
  0x3e   :  { %233 = vperm.xlu1 %577, %v42_v3   ;;  %333 = vperm.xlu0 %581, %v42_v3  }
  0x42   :  { %579 = vset.pattern.permute.xlu1 %v673_v12  ;;  %584 = vset.pattern.permute.xlu0 %v674_v13 }
  0x43   :  { %277 = vperm.xlu1 %579, %v42_v3   ;;  %417 = vperm.xlu0 %584, %v42_v3  }
  0x47   :  { %580 = vset.pattern.permute.xlu1 %v675_v14  ;;  %586 = vset.pattern.permute.xlu0 %v676_v15 }
  0x48   :  { %305 = vperm.xlu1 %580, %v42_v3  }
  0x4c   :  { %582 = vset.pattern.permute.xlu1 %v677_v16 }
  0x4d   :  { %361 = vperm.xlu1 %582, %v42_v3  }
  0x51   :  { %583 = vset.pattern.permute.xlu1 %v678_v17 }
  0x52   :  { %389 = vperm.xlu1 %583, %v42_v3  }
  0x56   :  { %585 = vset.pattern.permute.xlu1 %v676_v15 }
  0x57   :  { %445 = vperm.xlu1 %585, %v42_v3  }
  0xa9   :  { %v94_v23 = vpop.permute.xlu1 %93  ;;  %v66_v24 = vpop.permute.xlu0 %65 }
  0xaa   :  { %v99_v25 = vrot.slane %v94_v23, %v736_v20  ;;  %v71_v26 = vrot.slane %v66_v24, %v736_v20 }
  0xac   :  { %v100_v32 = vmul.f32 %v99_v25, %v738_v21  ;;  %v101_v33 = vmul.f32 %v99_v25, %v740_v22  ;;  %v72_v34 = vmul.f32 %v71_v26, %v738_v21  ;;  %v73_v35 = vmul.f32 %v71_v26, %v740_v22 }
  0xad   :  { %v74_v36 = vmul.f32 %v71_v26, %v751_v30  ;;  %v75_v37 = vmul.f32 %v71_v26, %v753_v31  ;;  %v102_v43 = vmul.f32 %v99_v25, %v751_v30  ;;  %v103_v44 = vmul.f32 %v99_v25, %v753_v31 }
  0xae   :  { %v122_v38 = vpop.permute.xlu1 %121  ;;  %v54_v39 = vpop.permute.xlu0 %53  ;;  %v108_v48 = vrot.slane %v100_v32, 2  ;;  %v109_v49 = vrot.slane %v101_v33, 2  ;;  %v80_v52 = vrot.slane %v72_v34, 1  ;;  %v81_v53 = vrot.slane %v73_v35, 1 }
  0xaf   :  { %v127_v50 = vrot.slane %v122_v38, %v736_v20  ;;  %v59_v51 = vrot.slane %v54_v39, %v736_v20  ;;  %v82_v54 = vrot.slane %v74_v36, 1  ;;  %v83_v55 = vrot.slane %v75_v37, 1 }
  0xb0   :  { %v110_v2 = vrot.slane %v102_v43, 2  ;;  %v111_v3 = vrot.slane %v103_v44, 2 }
  0xb1   :  { %v128_v56 = vmul.f32 %v127_v50, %v738_v21  ;;  %v129_v57 = vmul.f32 %v127_v50, %v740_v22  ;;  %v130_v58 = vmul.f32 %v127_v50, %v751_v30  ;;  %v131_v59 = vmul.f32 %v127_v50, %v753_v31 }
  0xb2   :  { %v60_v60 = vmul.f32 %v59_v51, %v738_v21  ;;  %v61_v61 = vmul.f32 %v59_v51, %v740_v22  ;;  %v62_v62 = vmul.f32 %v59_v51, %v751_v30  ;;  %v63_v63 = vmul.f32 %v59_v51, %v753_v31 }
  0xb3   :  { %v150_v0 = vpop.permute.xlu1 %149  ;;  %v178_v1 = vpop.permute.xlu0 %177  ;;  %v136_v4 = vrot.slane %v128_v56, 3  ;;  %v137_v5 = vrot.slane %v129_v57, 3  ;;  %v138_v10 = vrot.slane %v130_v58, 3  ;;  %v139_v11 = vrot.slane %v131_v59, 3 }
  0xb4   :  { %v88_v6 = vadd.f32 %v80_v52, %v60_v60  ;;  %v89_v7 = vadd.f32 %v81_v53, %v61_v61  ;;  %v90_v8 = vadd.f32 %v82_v54, %v62_v62  ;;  %v91_v9 = vadd.f32 %v83_v55, %v63_v63 }
  0xb5   :  { %v155_v12 = vrot.slane %v150_v0, %v736_v20  ;;  %v183_v13 = vrot.slane %v178_v1, %v736_v20 }
  0xb6   :  { %v116_v14 = vadd.f32 %v108_v48, %v88_v6  ;;  %v117_v15 = vadd.f32 %v109_v49, %v89_v7  ;;  %v118_v16 = vadd.f32 %v110_v2, %v90_v8  ;;  %v119_v17 = vadd.f32 %v111_v3, %v91_v9 }
  0xb7   :  { %v156_v23 = vmul.f32 %v155_v12, %v738_v21  ;;  %v157_v24 = vmul.f32 %v155_v12, %v740_v22  ;;  %v158_v25 = vmul.f32 %v155_v12, %v751_v30  ;;  %v159_v26 = vmul.f32 %v155_v12, %v753_v31  ;;  %v808_v12 = vld [vmem:[#allocation5 + $0x28] sm:$0xff] }
  0xb8   :  { %v206_v27 = vpop.permute.xlu1 %205  ;;  %v144_v29 = vadd.f32 %v136_v4, %v116_v14  ;;  %v145_v32 = vadd.f32 %v137_v5, %v117_v15  ;;  %v146_v33 = vadd.f32 %v138_v10, %v118_v16  ;;  %v147_v34 = vadd.f32 %v139_v11, %v119_v17  ;;  %v262_v35 = vpop.permute.xlu0 %261  ;;  %v806_v11 = vld [vmem:[#allocation5 + $0x20] sm:$0xff]  ;;  %v810_v17 = vld [vmem:[#allocation5 + $0x30] sm:$0xff] }
  0xb9   :  { %v164_v36 = vrot.slane %v156_v23, 4  ;;  %v165_v37 = vrot.slane %v157_v24, 4  ;;  %v166_v38 = vrot.slane %v158_v25, 4  ;;  %v167_v39 = vrot.slane %v159_v26, 4  ;;  %v812_v23 = vld [vmem:[#allocation5 + $0x38] sm:$0xff] }
  0xba   :  { %v184_v43 = vmul.f32 %v183_v13, %v738_v21  ;;  %v185_v44 = vmul.f32 %v183_v13, %v740_v22  ;;  %v186_v46 = vmul.f32 %v183_v13, %v751_v30  ;;  %v187_v48 = vmul.f32 %v183_v13, %v753_v31 }
  0xbb   :  { %v172_v49 = vadd.f32 %v164_v36, %v144_v29  ;;  %v173_v50 = vadd.f32 %v165_v37, %v145_v32  ;;  %v174_v51 = vadd.f32 %v166_v38, %v146_v33  ;;  %v175_v52 = vadd.f32 %v167_v39, %v147_v34 }
  0xbc   :  { %v192_v53 = vrot.slane %v184_v43, 5  ;;  %v193_v54 = vrot.slane %v185_v44, 5  ;;  %v194_v55 = vrot.slane %v186_v46, 5  ;;  %v195_v56 = vrot.slane %v187_v48, 5 }
  0xbd   :  { %v234_v57 = vpop.permute.xlu1 %233  ;;  %v334_v58 = vpop.permute.xlu0 %333  ;;  %v211_v59 = vrot.slane %v206_v27, %v736_v20  ;;  %v267_v61 = vrot.slane %v262_v35, %v736_v20 }
  0xbe   :  { %v239_v60 = vrot.slane %v234_v57, %v736_v20  ;;  %v339_v62 = vrot.slane %v334_v58, %v736_v20  ;;  %v200_v63 = vadd.f32 %v192_v53, %v172_v49  ;;  %v201_v0 = vadd.f32 %v193_v54, %v173_v50 }
  0xbf   :  { %v202_v1 = vadd.f32 %v194_v55, %v174_v51  ;;  %v203_v2 = vadd.f32 %v195_v56, %v175_v52  ;;  %v212_v3 = vmul.f32 %v211_v59, %v738_v21  ;;  %v213_v4 = vmul.f32 %v211_v59, %v740_v22 }
  0xc0   :  { %v214_v5 = vmul.f32 %v211_v59, %v751_v30  ;;  %v215_v6 = vmul.f32 %v211_v59, %v753_v31  ;;  %v240_v7 = vmul.f32 %v239_v60, %v738_v21  ;;  %v241_v8 = vmul.f32 %v239_v60, %v740_v22 }
  0xc1   :  { %v242_v9 = vmul.f32 %v239_v60, %v751_v30  ;;  %v243_v10 = vmul.f32 %v239_v60, %v753_v31  ;;  %v220_v13 = vrot.slane %v212_v3, 6  ;;  %v221_v14 = vrot.slane %v213_v4, 6 }
  0xc2   :  { %v222_v15 = vrot.slane %v214_v5, 6  ;;  %v223_v16 = vrot.slane %v215_v6, 6  ;;  %v278_v24 = vpop.permute.xlu1 %277  ;;  %v248_v21 = vrot.slane %v240_v7, 7  ;;  %v249_v25 = vrot.slane %v241_v8, 7  ;;  %v418_v8 = vpop.permute.xlu0 %417 }
  0xc3   :  { %v250_v22 = vrot.slane %v242_v9, 7  ;;  %v251_v26 = vrot.slane %v243_v10, 7  ;;  %v228_v30 = vadd.f32 %v220_v13, %v200_v63  ;;  %v229_v27 = vadd.f32 %v221_v14, %v201_v0 }
  0xc4   :  { %v230_v31 = vadd.f32 %v222_v15, %v202_v1  ;;  %v231_v29 = vadd.f32 %v223_v16, %v203_v2  ;;  %v268_v32 = vmul.f32 %v267_v61, %v806_v11  ;;  %v269_v33 = vmul.f32 %v267_v61, %v808_v12 }
  0xc5   :  { %v270_v34 = vmul.f32 %v267_v61, %v810_v17  ;;  %v271_v35 = vmul.f32 %v267_v61, %v812_v23  ;;  %v256_v36 = vadd.f32 %v248_v21, %v228_v30  ;;  %v257_v37 = vadd.f32 %v249_v25, %v229_v27 }
  0xc6   :  { %v258_v38 = vadd.f32 %v250_v22, %v230_v31  ;;  %v259_v39 = vadd.f32 %v251_v26, %v231_v29  ;;  %v283_v43 = vrot.slane %v278_v24, %v736_v20  ;;  %v340_v46 = vmul.f32 %v339_v62, %v806_v11 }
  0xc7   :  { %v306_v44 = vpop.permute.xlu1 %305  ;;  %v341_v48 = vmul.f32 %v339_v62, %v808_v12  ;;  %v342_v49 = vmul.f32 %v339_v62, %v810_v17  ;;  %v272_v50 = vadd.f32 %v268_v32, %v256_v36  ;;  %v273_v51 = vadd.f32 %v269_v33, %v257_v37 }
  0xc8   :  { %v274_v52 = vadd.f32 %v270_v34, %v258_v38  ;;  %v275_v53 = vadd.f32 %v271_v35, %v259_v39  ;;  %v284_v54 = vmul.f32 %v283_v43, %v806_v11  ;;  %v285_v55 = vmul.f32 %v283_v43, %v808_v12 }
  0xc9   :  { %v286_v56 = vmul.f32 %v283_v43, %v810_v17  ;;  %v287_v57 = vmul.f32 %v283_v43, %v812_v23  ;;  %v311_v58 = vrot.slane %v306_v44, %v736_v20  ;;  %v343_v59 = vmul.f32 %v339_v62, %v812_v23 }
  0xca   :  { %v348_v60 = vrot.slane %v340_v46, 3  ;;  %v349_v61 = vrot.slane %v341_v48, 3  ;;  %v292_v63 = vrot.slane %v284_v54, 1  ;;  %v293_v0 = vrot.slane %v285_v55, 1 }
  0xcb   :  { %v294_v1 = vrot.slane %v286_v56, 1  ;;  %v295_v2 = vrot.slane %v287_v57, 1  ;;  %v312_v3 = vmul.f32 %v311_v58, %v806_v11  ;;  %v313_v4 = vmul.f32 %v311_v58, %v808_v12 }
  0xcc   :  { %v314_v5 = vmul.f32 %v311_v58, %v810_v17  ;;  %v315_v6 = vmul.f32 %v311_v58, %v812_v23  ;;  %v362_v7 = vpop.permute.xlu1 %361  ;;  %v300_v9 = vadd.f32 %v292_v63, %v272_v50  ;;  %v301_v10 = vadd.f32 %v293_v0, %v273_v51 }
  0xcd   :  { %v302_v13 = vadd.f32 %v294_v1, %v274_v52  ;;  %v303_v62 = vadd.f32 %v295_v2, %v275_v53  ;;  %v320_v14 = vrot.slane %v312_v3, 2  ;;  %v321_v15 = vrot.slane %v313_v4, 2 }
  0xce   :  { %v322_v16 = vrot.slane %v314_v5, 2  ;;  %v323_v24 = vrot.slane %v315_v6, 2  ;;  %v350_v21 = vrot.slane %v342_v49, 3  ;;  %v351_v25 = vrot.slane %v343_v59, 3 }
  0xcf   :  { %v367_v22 = vrot.slane %v362_v7, %v736_v20  ;;  %v423_v26 = vrot.slane %v418_v8, %v736_v20  ;;  %v328_v30 = vadd.f32 %v320_v14, %v300_v9  ;;  %v329_v27 = vadd.f32 %v321_v15, %v301_v10 }
  0xd0   :  { %v330_v31 = vadd.f32 %v322_v16, %v302_v13  ;;  %v331_v29 = vadd.f32 %v323_v24, %v303_v62  ;;  %v489_v9 = vrot.slane %v748_v28, %v488_v42  ;;  %v506_v13 = vunpack.c.0.s8 %v772_v47 }
  0xd1   :  { %v368_v32 = vmul.f32 %v367_v22, %v806_v11  ;;  %v369_v33 = vmul.f32 %v367_v22, %v808_v12  ;;  %v370_v34 = vmul.f32 %v367_v22, %v810_v17  ;;  %v371_v35 = vmul.f32 %v367_v22, %v812_v23  ;;  %v390_v36 = vpop.permute.xlu1 %389 }
  0xd2   :  { %v356_v37 = vadd.f32 %v348_v60, %v328_v30  ;;  %v357_v38 = vadd.f32 %v349_v61, %v329_v27  ;;  %v358_v39 = vadd.f32 %v350_v21, %v330_v31  ;;  %v359_v43 = vadd.f32 %v351_v25, %v331_v29 }
  0xd3   :  { %v376_v44 = vrot.slane %v368_v32, 4  ;;  %v377_v46 = vrot.slane %v369_v33, 4  ;;  %v378_v48 = vrot.slane %v370_v34, 4  ;;  %v379_v49 = vrot.slane %v371_v35, 4 }
  0xd4   :  { %v395_v50 = vrot.slane %v390_v36, %v736_v20  ;;  %v424_v51 = vmul.f32 %v423_v26, %v806_v11  ;;  %v425_v52 = vmul.f32 %v423_v26, %v808_v12  ;;  %v426_v53 = vmul.f32 %v423_v26, %v810_v17 }
  0xd5   :  { %v384_v54 = vadd.f32 %v376_v44, %v356_v37  ;;  %v385_v55 = vadd.f32 %v377_v46, %v357_v38  ;;  %v386_v56 = vadd.f32 %v378_v48, %v358_v39  ;;  %v387_v57 = vadd.f32 %v379_v49, %v359_v43 }
  0xd6   :  { %v396_v58 = vmul.f32 %v395_v50, %v806_v11  ;;  %v397_v59 = vmul.f32 %v395_v50, %v808_v12  ;;  %v398_v60 = vmul.f32 %v395_v50, %v810_v17  ;;  %v399_v61 = vmul.f32 %v395_v50, %v812_v23  ;;  %v446_v63 = vpop.permute.xlu1 %445 }
  0xd7   :  { %v427_v0 = vmul.f32 %v423_v26, %v812_v23  ;;  %v432_v1 = vrot.slane %v424_v51, 6  ;;  %v433_v2 = vrot.slane %v425_v52, 6  ;;  %v434_v3 = vrot.slane %v426_v53, 6 }
  0xd8   :  { %v404_v4 = vrot.slane %v396_v58, 5  ;;  %v405_v5 = vrot.slane %v397_v59, 5  ;;  %v406_v6 = vrot.slane %v398_v60, 5  ;;  %v407_v7 = vrot.slane %v399_v61, 5 }
  0xd9   :  { %v435_v8 = vrot.slane %v427_v0, 6  ;;  %v451_v10 = vrot.slane %v446_v63, %v736_v20 }
  0xda   :  { %v412_v62 = vadd.f32 %v404_v4, %v384_v54  ;;  %v413_v14 = vadd.f32 %v405_v5, %v385_v55  ;;  %v414_v15 = vadd.f32 %v406_v6, %v386_v56  ;;  %v415_v16 = vadd.f32 %v407_v7, %v387_v57 }
  0xdb   :  { %v452_v24 = vmul.f32 %v451_v10, %v806_v11  ;;  %v453_v21 = vmul.f32 %v451_v10, %v808_v12  ;;  %v454_v25 = vmul.f32 %v451_v10, %v810_v17  ;;  %v455_v22 = vmul.f32 %v451_v10, %v812_v23 }
  0xdc   :  { %v440_v26 = vadd.f32 %v432_v1, %v412_v62  ;;  %v441_v30 = vadd.f32 %v433_v2, %v413_v14  ;;  %v442_v27 = vadd.f32 %v434_v3, %v414_v15  ;;  %v443_v42 = vadd.f32 %v435_v8, %v415_v16 }
  0xdd   :  { %v460_v31 = vrot.slane %v452_v24, 7  ;;  %v461_v29 = vrot.slane %v453_v21, 7  ;;  %v462_v32 = vrot.slane %v454_v25, 7  ;;  %v463_v47 = vrot.slane %v455_v22, 7 }
  0xde   :  { %v509_v11 = vsub.s32 %v506_v13, %v733_v19 }
  0xdf   :  { %v468_v33 = vadd.f32 %v460_v31, %v440_v26  ;;  %v469_v34 = vadd.f32 %v461_v29, %v441_v30  ;;  %v470_v35 = vadd.f32 %v462_v32, %v442_v27  ;;  %v471_v36 = vadd.f32 %v463_v47, %v443_v42 }
  0xe1   :  { %v494_v12 = vadd.f32 %v477_v40, %v468_v33  ;;  %v495_v17 = vadd.f32 %v764_v41, %v469_v34  ;;  %v496_v23 = vadd.f32 %v770_v45, %v470_v35  ;;  %v497_v37 = vadd.f32 %v489_v9, %v471_v36 }
  0xe3   :  { %v502_v38 = vcombine.low %v494_v12, %v495_v17  ;;  %v503_v39 = vcombine.low %v496_v23, %v497_v37 }
  0xe5   :  { %v510_v43 = vrot.slane %v502_v38, %v509_v11  ;;  %v517_v44 = vrot.slane %v503_v39, %v509_v11 }
  0xe7   :  { %v518_v46 = vcombine.low %v510_v43, %v517_v44 }
  0xe9   :  { %v525_v48 = vrot.slane %v518_v46, %v509_v11 }
  0xeb   :  { %531 = vst.msk [vmem:[#allocation7] sm:$0xf] %vm529_vm0, %v525_v48 }
  0xec   :  { %642 = shalt.err (!%p639_p6)
}
  0xed   :  { %s643_s16 = scalar_lea.hbm %s878_s3, 64 }
  0xee   :  { %p644_p7 = scmp.ne.s32.totalorder %s878_s3, %s643_s16  ;;  %p647_p8 = scmp.lt.u32.totalorder %s643_s16, %s878_s3 }
  0xf0   :  { %p649_p9 = pnand %p647_p8, %p644_p7 }
  0xf2   :  { %652 = shalt.err (!%p649_p9)
}
  0xf3   :  { %541 = dma.vmem_to_hbm [thread:$0]  %s539_s12, 64, %s878_s3, [#allocation4]  }
  0xf4   :  { %657 = dma.done.wait [#allocation4], 64  }
  0xf5   :  { %658 = vsyncadd [#allocation4], 4294967232 }
  0xf6   :  { %545 = vsyncpa [#allocation3], 1 }
  0xf7   :  { %546 = vsyncpa [#allocation6], 1 }
  0xf8   :  { %547 = vsyncpa [#allocation4], 1 }

</bundles_post_ra>
